<compile_context>
chip_gen: v7x
topology: tpu7x:2x2x1
jax: 0.10.0
libtpu: 0.0.40
codegen_flags: <defaults>
</compile_context>

<pallas_src>
import jax
import jax.numpy as jnp
from jax.experimental import pallas as pl
from jax.experimental.pallas import tpu as pltpu


def _round_up(x: int, m: int) -> int:
    return ((x + m - 1) // m) * m


def _make_parallel_kernel(n_branches: int):
    """Kernel over refs: (x_0..x_{n-1}, wpad_0..wpad_{n-1}, b, out)."""

    def kernel(*refs):
        x_refs = refs[:n_branches]
        w_refs = refs[n_branches:2 * n_branches]
        b_ref = refs[2 * n_branches]
        o_ref = refs[2 * n_branches + 1]
        acc = jnp.dot(x_refs[0][...], w_refs[0][...],
                      preferred_element_type=jnp.float32)
        for i in range(1, n_branches):
            acc = acc + jnp.dot(x_refs[i][...], w_refs[i][...],
                                preferred_element_type=jnp.float32)
        o_ref[...] = (acc + b_ref[...]).astype(o_ref.dtype)

    return kernel


def prepare_parallel_params(params, dtype=jnp.float32):
    """One-time parameter prep (hoisted out of the per-call path).

    params: list of (W_io, b) with W_io shaped (K_i, N_i) (already transposed
    from torch's (N_i, K_i)) and b shaped (1, N_i).

    Returns (ws_padded, b_cat):
      ws_padded[i] : (K_i, N_tot)  -- branch weight placed in its column slot
      b_cat        : (1, N_tot)    -- concatenated biases
    """
    ns = [w.shape[1] for (w, _) in params]
    n_tot = sum(ns)
    ws_padded = []
    col = 0
    for (w, _), n in zip(params, ns):
        k = w.shape[0]
        wp = jnp.zeros((k, n_tot), dtype=dtype).at[:, col:col + n].set(
            w.astype(dtype))
        ws_padded.append(wp)
        col += n
    b_cat = jnp.concatenate([b.astype(dtype) for (_, b) in params], axis=1)
    return tuple(ws_padded), b_cat


def _tile_rows(B: int, max_tile_rows: int):
    # >=2 grid steps when the batch allows it (shards across v7x's two
    # TensorCores; harmless on v5e/v6e which have a single TC).
    min_steps = 2 if B > 8 else 1
    nt = max(pl.cdiv(B, max_tile_rows), min_steps)
    TB = _round_up(pl.cdiv(B, nt), 8)
    B_pad = nt * TB
    return TB, B_pad, nt


def parallel_forward(inputs, prepared, *, max_tile_rows: int = 2048,
                     xla_fast_path_max_rows: int = 64):
    """inputs: tuple of (B, K_i) arrays.  prepared: output of
    prepare_parallel_params.  Returns (B, sum(N_i)) == torch.cat(dim=1)."""
    ws_padded, b_cat = prepared
    n_branches = len(inputs)
    assert n_branches == len(ws_padded)
    B = inputs[0].shape[0]
    n_tot = b_cat.shape[1]
    dtype = b_cat.dtype

    xs = [x.astype(dtype) for x in inputs]

    # Small-batch fast path: at tiny B the Pallas launch/pad/slice dominate.
    if B <= xla_fast_path_max_rows:
        acc = xs[0] @ ws_padded[0]
        for i in range(1, n_branches):
            acc = acc + xs[i] @ ws_padded[i]
        return acc + b_cat

    TB, B_pad, nt = _tile_rows(B, max_tile_rows)
    if B_pad != B:
        xs = [jnp.pad(x, ((0, B_pad - B), (0, 0))) for x in xs]
    grid = (nt,)

    x_specs = [pl.BlockSpec((TB, x.shape[1]), lambda i: (i, 0)) for x in xs]
    w_specs = [pl.BlockSpec((w.shape[0], n_tot), lambda i: (0, 0))
               for w in ws_padded]
    b_spec = pl.BlockSpec((1, n_tot), lambda i: (0, 0))

    out = pl.pallas_call(
        _make_parallel_kernel(n_branches),
        out_shape=jax.ShapeDtypeStruct((B_pad, n_tot), dtype),
        grid_spec=pltpu.PrefetchScalarGridSpec(
            num_scalar_prefetch=0,
            grid=grid,
            in_specs=x_specs + w_specs + [b_spec],
            out_specs=pl.BlockSpec((TB, n_tot), lambda i: (i, 0)),
        ),
        compiler_params=pltpu.CompilerParams(
            dimension_semantics=("parallel",),
        ),
    )(*xs, *ws_padded, b_cat)

    if B_pad != B:
        out = out[:B]
    return out


def reference_forward(inputs, params):
    outs = []
    for x, (w, b) in zip(inputs, params):
        outs.append(x @ w + b)
    return jnp.concatenate(outs, axis=1)


if __name__ == "__main__":
    key = jax.random.PRNGKey(0)
    B, K = 2, 32
    N1, N2 = 16, 24

    k_x1, k_x2, k_w1, k_b1, k_w2, k_b2 = jax.random.split(key, 6)

    # deterministic inputs (tuple, one per parallel branch)
    x1 = jax.random.normal(k_x1, (B, K), dtype=jnp.float32)
    x2 = jax.random.normal(k_x2, (B, K), dtype=jnp.float32)

    # deterministic parameters (nn.Linear weights stored as (in, out), bias (1, out))
    w1 = jax.random.normal(k_w1, (K, N1), dtype=jnp.float32) * 0.1
    b1 = jax.random.normal(k_b1, (1, N1), dtype=jnp.float32) * 0.1
    w2 = jax.random.normal(k_w2, (K, N2), dtype=jnp.float32) * 0.1
    b2 = jax.random.normal(k_b2, (1, N2), dtype=jnp.float32) * 0.1

    inputs = (x1, x2)
    params = [(w1, b1), (w2, b2)]
    prepared = prepare_parallel_params(params)

    ref = reference_forward(inputs, params)

    # 1) Force the Pallas path even at B=2 (correctness check of the kernel).
    out = jax.block_until_ready(
        parallel_forward(inputs, prepared, xla_fast_path_max_rows=0))
    assert out.shape == (B, N1 + N2), out.shape
    assert jnp.allclose(out, ref, atol=1e-5, rtol=1e-5), "mismatch vs reference"

    # 2) Default dispatch: small-batch XLA fast path.
    out_fast = jax.block_until_ready(parallel_forward(inputs, prepared))
    assert jnp.allclose(out_fast, ref, atol=1e-5, rtol=1e-5), "fast-path mismatch"

    # 3) Larger batch: multi-tile Pallas path with adaptive TB + minimal padding
    #    (B=1000 -> 2 tiles of 504 rows, 8 padded rows).
    Bb = 1000
    xb1 = jax.random.normal(jax.random.PRNGKey(1), (Bb, K), dtype=jnp.float32)
    xb2 = jax.random.normal(jax.random.PRNGKey(2), (Bb, K), dtype=jnp.float32)
    out_b = jax.block_until_ready(parallel_forward((xb1, xb2), prepared))
    ref_b = reference_forward((xb1, xb2), params)
    assert out_b.shape == (Bb, N1 + N2), out_b.shape
    assert jnp.allclose(out_b, ref_b, atol=1e-4, rtol=1e-4), "mismatch (batched)"

    print("KERNEL_OK")
</pallas_src>

<mosaic_0001>
module attributes {stable_mosaic.version = 11 : i64} {
  func.func @kernel(%arg0: i32, %arg1: memref<8x32xf32, #tpu.memory_space<vmem>>, %arg2: memref<8x32xf32, #tpu.memory_space<vmem>>, %arg3: memref<32x40xf32, #tpu.memory_space<vmem>>, %arg4: memref<32x40xf32, #tpu.memory_space<vmem>>, %arg5: memref<1x40xf32, #tpu.memory_space<vmem>>, %arg6: memref<8x40xf32, #tpu.memory_space<vmem>>) attributes {dimension_semantics = [#tpu.dimension_semantics<parallel>], iteration_bounds = array<i64: 1>, scalar_prefetch = 0 : i64, scratch_operands = 0 : i64, tpu.core_type = #tpu.core_type<tc>, window_params = [{transform_indices = @transform_0, window_bounds = array<i64: 8, 32>}, {transform_indices = @transform_1, window_bounds = array<i64: 8, 32>}, {pipeline_mode = #tpu.pipeline_mode<synchronous>, transform_indices = @transform_2, window_bounds = array<i64: 32, 40>}, {pipeline_mode = #tpu.pipeline_mode<synchronous>, transform_indices = @transform_3, window_bounds = array<i64: 32, 40>}, {pipeline_mode = #tpu.pipeline_mode<synchronous>, transform_indices = @transform_4, window_bounds = array<i64: 1, 40>}, {transform_indices = @transform_5, window_bounds = array<i64: 8, 40>}]} {
    %c0 = arith.constant 0 : index
    %c0_0 = arith.constant 0 : index
    %0 = vector.load %arg1[%c0, %c0_0] : memref<8x32xf32, #tpu.memory_space<vmem>>, vector<8x32xf32>
    %c0_1 = arith.constant 0 : index
    %c0_2 = arith.constant 0 : index
    %1 = vector.load %arg3[%c0_1, %c0_2] : memref<32x40xf32, #tpu.memory_space<vmem>>, vector<32x40xf32>
    %cst = arith.constant dense<0.000000e+00> : vector<8x40xf32>
    %2 = tpu.matmul %0, %1, %cst {dimension_numbers = #tpu.dot_dimension_numbers<[1], [0], [0], [1], [0, 0, 1, 1], [], []>} : vector<8x32xf32>, vector<32x40xf32>, vector<8x40xf32> -> vector<8x40xf32>
    %c0_3 = arith.constant 0 : index
    %c0_4 = arith.constant 0 : index
    %3 = vector.load %arg2[%c0_3, %c0_4] : memref<8x32xf32, #tpu.memory_space<vmem>>, vector<8x32xf32>
    %c0_5 = arith.constant 0 : index
    %c0_6 = arith.constant 0 : index
    %4 = vector.load %arg4[%c0_5, %c0_6] : memref<32x40xf32, #tpu.memory_space<vmem>>, vector<32x40xf32>
    %cst_7 = arith.constant dense<0.000000e+00> : vector<8x40xf32>
    %5 = tpu.matmul %3, %4, %cst_7 {dimension_numbers = #tpu.dot_dimension_numbers<[1], [0], [0], [1], [0, 0, 1, 1], [], []>} : vector<8x32xf32>, vector<32x40xf32>, vector<8x40xf32> -> vector<8x40xf32>
    %6 = arith.addf %2, %5 : vector<8x40xf32>
    %c0_8 = arith.constant 0 : index
    %c0_9 = arith.constant 0 : index
    %7 = vector.load %arg5[%c0_8, %c0_9] : memref<1x40xf32, #tpu.memory_space<vmem>>, vector<1x40xf32>
    %8 = vector.broadcast %7 : vector<1x40xf32> to vector<8x40xf32>
    %9 = arith.addf %6, %8 : vector<8x40xf32>
    %c0_10 = arith.constant 0 : index
    %c0_11 = arith.constant 0 : index
    %10 = vector.load %arg6[%c0_10, %c0_11] : memref<8x40xf32, #tpu.memory_space<vmem>>, vector<8x40xf32>
    tpu.vector_store %arg6[%c0_10, %c0_11], %9 {strides = array<i32>} : memref<8x40xf32, #tpu.memory_space<vmem>>, vector<8x40xf32>,
    return
  }
  func.func @transform_0(%arg0: i32) -> (i32, i32) {
    %c0_i32 = arith.constant 0 : i32
    %c0_i32_0 = arith.constant 0 : i32
    return %arg0, %c0_i32 : i32, i32
  }
  func.func @transform_1(%arg0: i32) -> (i32, i32) {
    %c0_i32 = arith.constant 0 : i32
    %c0_i32_0 = arith.constant 0 : i32
    return %arg0, %c0_i32 : i32, i32
  }
  func.func @transform_2(%arg0: i32) -> (i32, i32) {
    %c0_i32 = arith.constant 0 : i32
    %c0_i32_0 = arith.constant 0 : i32
    %c0_i32_1 = arith.constant 0 : i32
    return %c0_i32, %c0_i32_0 : i32, i32
  }
  func.func @transform_3(%arg0: i32) -> (i32, i32) {
    %c0_i32 = arith.constant 0 : i32
    %c0_i32_0 = arith.constant 0 : i32
    %c0_i32_1 = arith.constant 0 : i32
    return %c0_i32, %c0_i32_0 : i32, i32
  }
  func.func @transform_4(%arg0: i32) -> (i32, i32) {
    %c0_i32 = arith.constant 0 : i32
    %c0_i32_0 = arith.constant 0 : i32
    %c0_i32_1 = arith.constant 0 : i32
    return %c0_i32, %c0_i32_0 : i32, i32
  }
  func.func @transform_5(%arg0: i32) -> (i32, i32) {
    %c0_i32 = arith.constant 0 : i32
    %c0_i32_0 = arith.constant 0 : i32
    return %arg0, %c0_i32 : i32, i32
  }
}

</mosaic_0001>

<bundles_post_ra>
// kernel: tpu_custom_call.1
= control target key start
LH: loop header
LB: loop body
LE: loop exit
PB: predicated region body
PF: predicated region fallthrough
CT: control target
= control target key end

     0   :  { %10 = vsyncpa [#allocation3], 0  ;;  %s534_s0 = inlined_call_operand.hbm [shape: f32[8,32], index: 0, kind: input, shape index: {}]   ;;  %s535_s1 = inlined_call_operand.hbm [shape: f32[8,32], index: 1, kind: input, shape index: {}]   ;;  %s536_s2 = inlined_call_operand.hbm [shape: f32[32,40], index: 2, kind: input, shape index: {}]   ;;  %s537_s3 = inlined_call_operand.hbm [shape: f32[32,40], index: 3, kind: input, shape index: {}]   ;;  %s538_s4 = inlined_call_operand.vmem [shape: f32[1,40], index: 4, kind: input, shape index: {}]   ;;  %s539_s5 = inlined_call_operand.hbm [shape: f32[8,40], index: 5, kind: output, shape index: {}]  }
   0x1   :  { %11 = vsyncpa [#allocation6], 0 }
   0x2   :  { %12 = vsyncpa [#allocation9], 0 }
   0x3   :  { %13 = vsyncpa [#allocation4], 0  ;;  %s431_s18 = smov [#allocation5]   ;;  %s432_s20 = smov [#allocation2]  }
   0x4   :  { %s30_s19 = sshll.u32 %s431_s18, 4  ;;  %s20_s21 = sshll.u32 %s432_s20, 4  ;;  %s31_s19 = int_to_ptr.vmem [resolvable:$true] %s30_s19  ;;  %s21_s21 = int_to_ptr.vmem [resolvable:$true] %s20_s21 }
   0x5   :  { %s313_s24 = scalar_lea.hbm %s535_s1, 128 }
   0x6   :  { %p314_p0 = scmp.ne.s32.totalorder %s535_s1, %s313_s24  ;;  %p317_p1 = scmp.lt.u32.totalorder %s313_s24, %s535_s1 }
   0x8   :  { %p319_p2 = pnand %p317_p1, %p314_p0 }
   0xa   :  { %322 = shalt.err (!%p319_p2)
}
   0xb   :  { %s323_s29 = scalar_lea.vmem %s31_s19, 128  ;;  %p328_p4 = scmp.lt.s32.totalorder %s31_s19, %s31_s19 }
   0xc   :  { %p324_p3 = scmp.ne.s32.totalorder %s31_s19, %s323_s29  ;;  %p329_p5 = scmp.lt.s32.totalorder %s323_s29, %s323_s29 }
   0xe   :  { %p330_p6 = por %p329_p5, %p328_p4 }
  0x10   :  { %p331_p7 = pnand %p330_p6, %p324_p3 }
  0x12   :  { %334 = shalt.err (!%p331_p7)
}
  0x13   :  { %33 = dma.hbm_to_vmem [thread:$0]  %s535_s1, 128, %s31_s19, [#allocation6]  }
  0x14   :  { %s335_s9 = scalar_lea.hbm %s534_s0, 128 }
  0x15   :  { %p336_p8 = scmp.ne.s32.totalorder %s534_s0, %s335_s9  ;;  %p339_p9 = scmp.lt.u32.totalorder %s335_s9, %s534_s0 }
  0x17   :  { %p341_p10 = pnand %p339_p9, %p336_p8 }
  0x19   :  { %344 = shalt.err (!%p341_p10)
}
  0x1a   :  { %s345_s14 = scalar_lea.vmem %s21_s21, 128  ;;  %p350_p12 = scmp.lt.s32.totalorder %s21_s21, %s21_s21 }
  0x1b   :  { %p346_p11 = scmp.ne.s32.totalorder %s21_s21, %s345_s14  ;;  %p351_p13 = scmp.lt.s32.totalorder %s345_s14, %s345_s14 }
  0x1d   :  { %p352_p0 = por %p351_p13, %p350_p12 }
  0x1f   :  { %p353_p1 = pnand %p352_p0, %p346_p11 }
  0x21   :  { %356 = shalt.err (!%p353_p1)
}
  0x22   :  { %23 = dma.hbm_to_vmem [thread:$0]  %s534_s0, 128, %s21_s21, [#allocation3]  }
  0x23   :  { %s433_s16 = smov [#allocation7]   ;;  %s357_s20 = scalar_lea.hbm %s536_s2, 512 }
  0x24   :  { %s39_s17 = sshll.u32 %s433_s16, 4  ;;  %p358_p2 = scmp.ne.s32.totalorder %s536_s2, %s357_s20  ;;  %s40_s17 = int_to_ptr.vmem [resolvable:$true] %s39_s17 }
  0x25   :  { %p361_p3 = scmp.lt.u32.totalorder %s357_s20, %s536_s2 }
  0x27   :  { %p363_p4 = pnand %p361_p3, %p358_p2 }
  0x29   :  { %366 = shalt.err (!%p363_p4)
}
  0x2a   :  { %s367_s26 = scalar_lea.vmem %s40_s17, 512  ;;  %p372_p6 = scmp.lt.s32.totalorder %s40_s17, %s40_s17 }
  0x2b   :  { %p368_p5 = scmp.ne.s32.totalorder %s40_s17, %s367_s26  ;;  %p373_p7 = scmp.lt.s32.totalorder %s367_s26, %s367_s26 }
  0x2d   :  { %p374_p8 = por %p373_p7, %p372_p6 }
  0x2f   :  { %p375_p9 = pnand %p374_p8, %p368_p5 }
  0x31   :  { %378 = shalt.err (!%p375_p9)
}
  0x32   :  { %s434_s0 = smov 128   ;;  %s435_s21 = smov 8  }
  0x33   :  { %45 = dma.hbm_to_vmem [thread:$0]  %s536_s2, 512, %s40_s17, [#allocation6], %s434_s0, %s434_s0, %s435_s21  }
  0x34   :  { %s436_s29 = smov [#allocation8]   ;;  %s379_s8 = scalar_lea.hbm %s537_s3, 512 }
  0x35   :  { %s51_s30 = sshll.u32 %s436_s29, 4  ;;  %p380_p10 = scmp.ne.s32.totalorder %s537_s3, %s379_s8  ;;  %s52_s30 = int_to_ptr.vmem [resolvable:$true] %s51_s30 }
  0x36   :  { %p383_p11 = scmp.lt.u32.totalorder %s379_s8, %s537_s3 }
  0x38   :  { %p385_p12 = pnand %p383_p11, %p380_p10 }
  0x3a   :  { %388 = shalt.err (!%p385_p12)
}
  0x3b   :  { %s389_s13 = scalar_lea.vmem %s52_s30, 512  ;;  %p394_p0 = scmp.lt.s32.totalorder %s52_s30, %s52_s30 }
  0x3c   :  { %p390_p13 = scmp.ne.s32.totalorder %s52_s30, %s389_s13  ;;  %p395_p1 = scmp.lt.s32.totalorder %s389_s13, %s389_s13 }
  0x3e   :  { %p396_p2 = por %p395_p1, %p394_p0 }
  0x40   :  { %p397_p3 = pnand %p396_p2, %p390_p13 }
  0x42   :  { %400 = shalt.err (!%p397_p3)
}
  0x43   :  { %57 = dma.hbm_to_vmem [thread:$0]  %s537_s3, 512, %s52_s30, [#allocation9], %s434_s0, %s434_s0, %s435_s21  }
  0x44   :  { %423 = dma.done.wait [#allocation3], 128  }
  0x45   :  { %424 = vsyncadd [#allocation3], 4294967168 }
  0x46   :  { %425 = dma.done.wait [#allocation6], 640  }
  0x47   :  { %426 = vsyncadd [#allocation6], 4294966656 }
  0x48   :  { %427 = dma.done.wait [#allocation9], 512  }
  0x49   :  { %428 = vsyncadd [#allocation9], 4294966784  ;;  %v437_v0 = vmov 0.0|0.0   ;;  %vm438_vm0 = vmmov 0   ;;  %v439_v1 = vmov 0.0   ;;  %v78_v2 = vld [vmem:[#allocation8] sm:$0xff] }
  0x4a   :  { %291 = vmatprep.subr.bf16.mxu0 %v437_v0  ;;  %297 = vmatprep.subr.bf16.mxu1 %v437_v0  ;;  %v79_v3 = vld [vmem:[#allocation8 + $0x8] sm:$0xff]  ;;  %v73_v4 = vld [vmem:[#allocation7] sm:$0xff]  ;;  %v80_v7 = vld [vmem:[#allocation8 + $0x10] sm:$0xff]  ;;  %vm82_vm1 = vcmask 261120   ;;  %s440_s15 = smov [#allocation10]   ;;  %vm237_vm2 = vcmask 326656  }
  0x4b   :  { %277 = vmatprep.mubr.msk.f32.mxu0 %vm438_vm0, %v439_v1  ;;  %288 = vmatprep.mubr.msk.f32.mxu1 %vm438_vm0, %v439_v1  ;;  %v292_v5 = vpack.c.bf16 %v79_v3, %v78_v2  ;;  %v74_v6 = vld [vmem:[#allocation7 + $0x8] sm:$0xff]  ;;  %v81_v8 = vld [vmem:[#allocation8 + $0x18] sm:$0xff]  ;;  %v75_v10 = vld [vmem:[#allocation7 + $0x10] sm:$0xff]  ;;  %s245_s16 = sshll.u32 %s440_s15, 4  ;;  %s246_s16 = int_to_ptr.vmem [resolvable:$true] %s245_s16 }
  0x4c   :  { %v298_v9 = vpack.c.bf16 %v74_v6, %v73_v4  ;;  %v76_v11 = vld [vmem:[#allocation7 + $0x18] sm:$0xff]  ;;  %v295_v12 = vpack.c.bf16 %v81_v8, %v80_v7  ;;  %v72_v15 = vld [vmem:[#allocation2] sm:$0xff]  ;;  %s401_s17 = scalar_lea.vmem %s246_s16, 128  ;;  %p406_p5 = scmp.lt.s32.totalorder %s246_s16, %s246_s16 }
  0x4d   :  { %293 = vmatpush3.bf16.msra.mxu0 %v292_v5  ;;  %v301_v13 = vpack.c.bf16 %v76_v11, %v75_v10  ;;  %v77_v14 = vld [vmem:[#allocation5] sm:$0xff]  ;;  %v258_v18 = vld [vmem:[%s538_s4] ss:$0 sm:$0xff]  ;;  %p402_p4 = scmp.ne.s32.totalorder %s246_s16, %s401_s17  ;;  %p407_p6 = scmp.lt.s32.totalorder %s401_s17, %s401_s17 }
  0x4e   :  { %299 = vmatpush3.bf16.msra.mxu1 %v298_v9  ;;  %294 = vmatprep.subr.bf16.mxu0 %v437_v0 }
  0x4f   :  { %300 = vmatprep.subr.bf16.mxu1 %v437_v0  ;;  %p408_p7 = por %p407_p6, %p406_p5 }
  0x51   :  { %296 = vmatpush3.bf16.msra.mxu0 %v295_v12  ;;  %p409_p8 = pnand %p408_p7, %p402_p4 }
  0x52   :  { %302 = vmatpush3.bf16.msra.mxu1 %v301_v13 }
  0x54   :  { %278 = vmatmul.mubr.msk.f32.vlgmr.msra.gmra.mrb[0].mxu0 %vm82_vm1, %v77_v14 }
  0x55   :  { %289 = vmatmul.mubr.msk.f32.vlgmr.msra.gmra.mrb[0].mxu1 %vm82_vm1, %v72_v15 }
 0x127   :  { %v152_v16 = vpop.f32.mrb[0].mxu0 }
 0x128   :  { %v225_v17 = vpop.f32.mrb[0].mxu1  ;;  %v279_v19 = vpop.f32.mrb[1].mxu0 }
 0x129   :  { %v226_v20 = vadd.f32 %v225_v17, %v152_v16  ;;  %v290_v21 = vpop.f32.mrb[1].mxu1 }
 0x12b   :  { %v236_v22 = vadd.f32 %v258_v18, %v226_v20 }
 0x12d   :  { %238 = vst.msk [vmem:[#allocation10] sm:$0xff] %vm237_vm2, %v236_v22 }
 0x12e   :  { %412 = shalt.err (!%p409_p8)
}
 0x12f   :  { %s413_s4 = scalar_lea.hbm %s539_s5, 128 }
 0x130   :  { %p414_p9 = scmp.ne.s32.totalorder %s539_s5, %s413_s4  ;;  %p417_p10 = scmp.lt.u32.totalorder %s413_s4, %s539_s5 }
 0x132   :  { %p419_p11 = pnand %p417_p10, %p414_p9 }
 0x134   :  { %422 = shalt.err (!%p419_p11)
}
 0x135   :  { %248 = dma.vmem_to_hbm [thread:$0]  %s246_s16, 128, %s539_s5, [#allocation4]  }
 0x136   :  { %429 = dma.done.wait [#allocation4], 128  }
 0x137   :  { %430 = vsyncadd [#allocation4], 4294967168 }
 0x138   :  { %252 = vsyncpa [#allocation3], 1 }
 0x139   :  { %253 = vsyncpa [#allocation6], 1 }
 0x13a   :  { %254 = vsyncpa [#allocation9], 1 }
 0x13b   :  { %255 = vsyncpa [#allocation4], 1 }

</bundles_post_ra>
